<compile_context>
chip_gen: v5e
topology: v5e:2x2
jax: 0.10.0
libtpu: 0.0.40
codegen_flags: <defaults>
</compile_context>

<pallas_src>
from functools import partial

import jax
import jax.numpy as jnp
from jax import lax
from jax.experimental import pallas as pl
from jax.experimental.pallas import tpu as pltpu


def _round_up(x: int, m: int) -> int:
    return ((x + m - 1) // m) * m


# Keep the double-buffered working set below every generation's default
# scoped-VMEM limit (v5e: 16 MiB, v6e/v7x: 32 MiB) -> no vmem_limit override.
_VMEM_BUDGET = 12 * 1024 * 1024


def _pick_m_tiling(M: int, want: int):
    """Pick (tm, m_pad). Prefer exact divisors of M (no pad, no output slice)."""
    want = max(8, min(want, _round_up(M, 8)))
    for cand in (1024, 768, 512, 384, 256, 128):
        if cand <= want and M % cand == 0:
            return cand, M
    if M <= want:                       # small M: a single (8-aligned) tile
        tm = _round_up(M, 8)
        return tm, tm
    tm = _round_up(want, 8)             # fallback: pad M up to the tile
    return tm, _round_up(M, tm)


def patch_embed_kernel(x_ref, w_ref, b_ref, o_ref):
    # x_ref: (TM, Kp) patch rows; w_ref: (Kp, TN); b_ref: (1, TN) f32.
    acc = jnp.dot(x_ref[...], w_ref[...], preferred_element_type=jnp.float32)
    o_ref[...] = (acc + b_ref[...]).astype(o_ref.dtype)   # epilogue stays f32


@partial(jax.jit,
         static_argnames=("patch_size", "tm", "compute_dtype", "out_dtype"))
def patch_embeddings(x, weight, bias, patch_size, *, tm=512,
                     compute_dtype=jnp.bfloat16, out_dtype=None):
    """x: (B, C, H, W) NCHW; weight: (hidden, C, P, P); bias: (hidden,)."""
    if out_dtype is None:
        out_dtype = compute_dtype

    B, C, H, W = x.shape
    hidden = weight.shape[0]
    P = patch_size
    nh, nw = H // P, W // P            # Conv2d VALID-with-stride=P semantics
    num_patches = nh * nw

    # Crop trailing pixels not covered by a full patch (matches nn.Conv2d).
    if H != nh * P or W != nw * P:
        x = x[:, :, :nh * P, :nw * P]

    M = B * num_patches
    K = C * P * P
    N = hidden

    cb = jnp.dtype(compute_dtype).itemsize
    ob = jnp.dtype(out_dtype).itemsize

    # ---- tile selection -----------------------------------------------------
    Kp = _round_up(K, 128)              # lane-dense contraction dim
    n_pad128 = _round_up(N, 128)        # lane-dense output / weight columns

    def _vmem_est(tm_, tn_):            # double-buffered in/out + f32 bias
        return 2 * (tm_ * Kp * cb + Kp * tn_ * cb + tn_ * 4 + tm_ * tn_ * ob)

    tm_want = max(8, min(tm, _round_up(M, 8)))

    # Keep the whole hidden dim as one resident N tile whenever it fits the
    # VMEM budget (weight DMA'd once); otherwise tile N (grid is M-outer /
    # N-inner below, so the patch matrix is still streamed only once).
    tn = n_pad128
    if _vmem_est(tm_want, tn) > _VMEM_BUDGET and n_pad128 > 512:
        tn = 512
    while _vmem_est(tm_want, tn) > _VMEM_BUDGET and tm_want > 128:
        tm_want //= 2
    n_pad = _round_up(N, tn)

    tm, m_pad = _pick_m_tiling(M, tm_want)

    # ---- im2col + operand prep (single XLA fusion; fusable into pallas_call)
    # Row order (b, ph, pw) matches conv-output flatten(2); inner order
    # (c, ph, pw) matches OIHW weights.  Cast first so any materialised
    # intermediate is already in the (half-width) compute dtype.
    patches = x.astype(compute_dtype)
    patches = patches.reshape(B, C, nh, P, nw, P)
    patches = patches.transpose(0, 2, 4, 1, 3, 5).reshape(M, K)
    if m_pad != M or Kp != K:
        patches = jnp.pad(patches, ((0, m_pad - M), (0, Kp - K)))

    w2 = weight.reshape(hidden, K).T.astype(compute_dtype)          # (K, N)
    if Kp != K or n_pad != N:
        w2 = jnp.pad(w2, ((0, Kp - K), (0, n_pad - N)))              # exact
    b2 = jnp.pad(bias.astype(jnp.float32), (0, n_pad - N)).reshape(1, n_pad)

    grid = (m_pad // tm, n_pad // tn)   # M outer, N inner

    cost = pl.CostEstimate(
        flops=2 * m_pad * Kp * n_pad,
        transcendentals=0,
        bytes_accessed=(m_pad * Kp * cb + Kp * n_pad * cb
                        + n_pad * 4 + m_pad * n_pad * ob),
    )

    out = pl.pallas_call(
        patch_embed_kernel,
        out_shape=jax.ShapeDtypeStruct((m_pad, n_pad), out_dtype),
        grid=grid,
        in_specs=[
            pl.BlockSpec((tm, Kp), lambda i, j: (i, 0)),   # patch rows (const over j)
            pl.BlockSpec((Kp, tn), lambda i, j: (0, j)),   # weight
            pl.BlockSpec((1, tn), lambda i, j: (0, j)),    # bias (f32)
        ],
        out_specs=pl.BlockSpec((tm, tn), lambda i, j: (i, j)),
        compiler_params=pltpu.CompilerParams(
            dimension_semantics=("parallel", "parallel"),
            allow_input_fusion=[True, False, False],
        ),
        cost_estimate=cost,
    )(patches, w2, b2)

    out = out[:M, :N]                   # no-op when no padding was needed
    return out.reshape(B, num_patches, hidden)


def reference_patch_embeddings(x, weight, bias, patch_size):
    # Pure-JAX reference: strided conv (NCHW/OIHW) + flatten + transpose.
    y = lax.conv_general_dilated(
        x, weight,
        window_strides=(patch_size, patch_size),
        padding="VALID",
        dimension_numbers=("NCHW", "OIHW", "NCHW"),
    ) + bias.reshape(1, -1, 1, 1)
    B, Cout, Hp, Wp = y.shape
    return y.reshape(B, Cout, Hp * Wp).transpose(0, 2, 1)


if __name__ == "__main__":
    # Small, deterministic configuration consistent with the module's forward.
    batch = 2
    num_channels = 3
    image_size = 32
    patch_size = 16
    hidden_size = 48

    key = jax.random.PRNGKey(0)
    kx, kw, kb = jax.random.split(key, 3)

    x = jax.random.normal(kx, (batch, num_channels, image_size, image_size),
                          dtype=jnp.float32)
    # Conv2d parameter shapes: weight (hidden, C, P, P), bias (hidden,)
    weight = jax.random.normal(
        kw, (hidden_size, num_channels, patch_size, patch_size),
        dtype=jnp.float32) * 0.02
    bias = jax.random.normal(kb, (hidden_size,), dtype=jnp.float32) * 0.02

    ref = reference_patch_embeddings(x, weight, bias, patch_size)
    expected_shape = (batch, (image_size // patch_size) ** 2, hidden_size)

    # f32 path: identical math to the PyTorch module (tight parity check).
    out_f32 = patch_embeddings(x, weight, bias, patch_size,
                               compute_dtype=jnp.float32)
    out_f32 = jax.block_until_ready(out_f32)
    assert out_f32.shape == expected_shape
    assert out_f32.dtype == jnp.float32
    assert jnp.allclose(out_f32, ref, atol=1e-4, rtol=1e-4)

    # Default fast path: bf16 operands + bf16 output, f32 accumulation/epilogue.
    out = patch_embeddings(x, weight, bias, patch_size)
    out = jax.block_until_ready(out)
    assert out.shape == expected_shape
    assert out.dtype == jnp.bfloat16
    assert jnp.allclose(out.astype(jnp.float32), ref, atol=3e-2, rtol=3e-2)

    print("KERNEL_OK")
</pallas_src>

<mosaic_0001>
module attributes {stable_mosaic.version = 11 : i64} {
  func.func @patch_embed_kernel(%arg0: i32, %arg1: i32, %arg2: memref<8x768xf32, #tpu.memory_space<vmem>>, %arg3: memref<768x128xf32, #tpu.memory_space<vmem>>, %arg4: memref<1x128xf32, #tpu.memory_space<vmem>>, %arg5: memref<8x128xf32, #tpu.memory_space<vmem>>) attributes {dimension_semantics = [#tpu.dimension_semantics<parallel>, #tpu.dimension_semantics<parallel>], iteration_bounds = array<i64: 1, 1>, scalar_prefetch = 0 : i64, scratch_operands = 0 : i64, tpu.core_type = #tpu.core_type<tc>, window_params = [{transform_indices = @transform_0, window_bounds = array<i64: 8, 768>}, {transform_indices = @transform_1, window_bounds = array<i64: 768, 128>}, {transform_indices = @transform_2, window_bounds = array<i64: 1, 128>}, {transform_indices = @transform_3, window_bounds = array<i64: 8, 128>}]} {
    %c0 = arith.constant 0 : index
    %c0_0 = arith.constant 0 : index
    %0 = vector.load %arg2[%c0, %c0_0] : memref<8x768xf32, #tpu.memory_space<vmem>>, vector<8x768xf32>
    %c0_1 = arith.constant 0 : index
    %c0_2 = arith.constant 0 : index
    %1 = vector.load %arg3[%c0_1, %c0_2] : memref<768x128xf32, #tpu.memory_space<vmem>>, vector<768x128xf32>
    %cst = arith.constant dense<0.000000e+00> : vector<8x128xf32>
    %2 = tpu.matmul %0, %1, %cst {dimension_numbers = #tpu.dot_dimension_numbers<[1], [0], [0], [1], [0, 0, 1, 1], [], []>} : vector<8x768xf32>, vector<768x128xf32>, vector<8x128xf32> -> vector<8x128xf32>
    %c0_3 = arith.constant 0 : index
    %c0_4 = arith.constant 0 : index
    %3 = vector.load %arg4[%c0_3, %c0_4] : memref<1x128xf32, #tpu.memory_space<vmem>>, vector<1x128xf32>
    %4 = vector.broadcast %3 : vector<1x128xf32> to vector<8x128xf32>
    %5 = arith.addf %2, %4 : vector<8x128xf32>
    %c0_5 = arith.constant 0 : index
    %c0_6 = arith.constant 0 : index
    %6 = vector.load %arg5[%c0_5, %c0_6] : memref<8x128xf32, #tpu.memory_space<vmem>>, vector<8x128xf32>
    tpu.vector_store %arg5[%c0_5, %c0_6], %5 {strides = array<i32>} : memref<8x128xf32, #tpu.memory_space<vmem>>, vector<8x128xf32>,
    return
  }
  func.func @transform_0(%arg0: i32, %arg1: i32) -> (i32, i32) {
    %c0_i32 = arith.constant 0 : i32
    %c0_i32_0 = arith.constant 0 : i32
    return %arg0, %c0_i32 : i32, i32
  }
  func.func @transform_1(%arg0: i32, %arg1: i32) -> (i32, i32) {
    %c0_i32 = arith.constant 0 : i32
    %c0_i32_0 = arith.constant 0 : i32
    return %c0_i32, %arg1 : i32, i32
  }
  func.func @transform_2(%arg0: i32, %arg1: i32) -> (i32, i32) {
    %c0_i32 = arith.constant 0 : i32
    %c0_i32_0 = arith.constant 0 : i32
    return %c0_i32, %arg1 : i32, i32
  }
  func.func @transform_3(%arg0: i32, %arg1: i32) -> (i32, i32) {
    %c0_i32 = arith.constant 0 : i32
    return %arg0, %arg1 : i32, i32
  }
}

</mosaic_0001>

<bundles_post_ra>
// kernel: patch_embeddings.1
= control target key start
LH: loop header
LB: loop body
LE: loop exit
PB: predicated region body
PF: predicated region fallthrough
CT: control target
= control target key end

     0   :  { %s619_s0 = inlined_call_operand.vmem [shape: f32[8,768], index: 0, kind: input, shape index: {}]   ;;  %s620_s1 = inlined_call_operand.vmem [shape: f32[768,128], index: 1, kind: input, shape index: {}]   ;;  %s621_s2 = inlined_call_operand.vmem [shape: f32[1,128], index: 2, kind: input, shape index: {}]   ;;  %s622_s3 = inlined_call_operand.hbm [shape: f32[8,128], index: 3, kind: output, shape index: {}]  }
   0x1   :  { %v36_v0 = vld [vmem:[%s620_s1 + $0x78] sm:$0xff]  ;;  %v35_v1 = vld [vmem:[%s620_s1 + $0x70] sm:$0xff]  ;;  %v34_v4 = vld [vmem:[%s620_s1 + $0x68] sm:$0xff] }
   0x2   :  { %v52_v2 = vld [vmem:[%s620_s1 + $0xf8] sm:$0xff]  ;;  %121 = vmatpush.msra.mxu0 %v36_v0  ;;  %v51_v3 = vld [vmem:[%s620_s1 + $0xf0] sm:$0xff]  ;;  %v50_v5 = vld [vmem:[%s620_s1 + $0xe8] sm:$0xff] }
   0x3   :  { %141 = vmatpush.msra.mxu1 %v52_v2  ;;  %v33_v6 = vld [vmem:[%s620_s1 + $0x60] sm:$0xff]  ;;  %v32_v8 = vld [vmem:[%s620_s1 + $0x58] sm:$0xff]  ;;  %v31_v10 = vld [vmem:[%s620_s1 + $0x50] sm:$0xff] }
   0x4   :  { %122 = vmatpush.msra.mxu0 %v35_v1  ;;  %v49_v7 = vld [vmem:[%s620_s1 + $0xe0] sm:$0xff]  ;;  %v48_v9 = vld [vmem:[%s620_s1 + $0xd8] sm:$0xff]  ;;  %v47_v12 = vld [vmem:[%s620_s1 + $0xd0] sm:$0xff] }
   0x5   :  { %142 = vmatpush.msra.mxu1 %v51_v3  ;;  %v68_v11 = vld [vmem:[%s620_s1 + $0x178] sm:$0xff]  ;;  %v67_v13 = vld [vmem:[%s620_s1 + $0x170] sm:$0xff]  ;;  %v66_v15 = vld [vmem:[%s620_s1 + $0x168] sm:$0xff] }
   0x6   :  { %123 = vmatpush.msra.mxu0 %v34_v4  ;;  %161 = vmatpush.msra.mxu2 %v68_v11  ;;  %v84_v14 = vld [vmem:[%s620_s1 + $0x1f8] sm:$0xff]  ;;  %v83_v16 = vld [vmem:[%s620_s1 + $0x1f0] sm:$0xff]  ;;  %v30_v17 = vld [vmem:[%s620_s1 + $0x48] sm:$0xff] }
   0x7   :  { %143 = vmatpush.msra.mxu1 %v50_v5  ;;  %v46_v18 = vld [vmem:[%s620_s1 + $0xc8] sm:$0xff]  ;;  %181 = vmatpush.msra.mxu3 %v84_v14  ;;  %v65_v19 = vld [vmem:[%s620_s1 + $0x160] sm:$0xff]  ;;  %v64_v23 = vld [vmem:[%s620_s1 + $0x158] sm:$0xff] }
   0x8   :  { %124 = vmatpush.msra.mxu0 %v33_v6  ;;  %162 = vmatpush.msra.mxu2 %v67_v13  ;;  %v82_v20 = vld [vmem:[%s620_s1 + $0x1e8] sm:$0xff]  ;;  %v29_v21 = vld [vmem:[%s620_s1 + $0x40] sm:$0xff]  ;;  %v28_v25 = vld [vmem:[%s620_s1 + $0x38] sm:$0xff] }
   0x9   :  { %144 = vmatpush.msra.mxu1 %v49_v7  ;;  %v45_v22 = vld [vmem:[%s620_s1 + $0xc0] sm:$0xff]  ;;  %182 = vmatpush.msra.mxu3 %v83_v16  ;;  %v44_v26 = vld [vmem:[%s620_s1 + $0xb8] sm:$0xff]  ;;  %v63_v27 = vld [vmem:[%s620_s1 + $0x150] sm:$0xff] }
   0xa   :  { %125 = vmatpush.msra.mxu0 %v32_v8  ;;  %163 = vmatpush.msra.mxu2 %v66_v15  ;;  %v81_v24 = vld [vmem:[%s620_s1 + $0x1e0] sm:$0xff]  ;;  %v80_v28 = vld [vmem:[%s620_s1 + $0x1d8] sm:$0xff]  ;;  %v27_v29 = vld [vmem:[%s620_s1 + $0x30] sm:$0xff] }
   0xb   :  { %145 = vmatpush.msra.mxu1 %v48_v9  ;;  %183 = vmatpush.msra.mxu3 %v82_v20  ;;  %v43_v30 = vld [vmem:[%s620_s1 + $0xb0] sm:$0xff]  ;;  %v62_v31 = vld [vmem:[%s620_s1 + $0x148] sm:$0xff]  ;;  %v61_v35 = vld [vmem:[%s620_s1 + $0x140] sm:$0xff] }
   0xc   :  { %126 = vmatpush.msra.mxu0 %v31_v10  ;;  %164 = vmatpush.msra.mxu2 %v65_v19  ;;  %v79_v32 = vld [vmem:[%s620_s1 + $0x1d0] sm:$0xff]  ;;  %v26_v33 = vld [vmem:[%s620_s1 + $0x28] sm:$0xff]  ;;  %v25_v37 = vld [vmem:[%s620_s1 + $0x20] sm:$0xff] }
   0xd   :  { %146 = vmatpush.msra.mxu1 %v47_v12  ;;  %184 = vmatpush.msra.mxu3 %v81_v24  ;;  %v42_v34 = vld [vmem:[%s620_s1 + $0xa8] sm:$0xff]  ;;  %v41_v38 = vld [vmem:[%s620_s1 + $0xa0] sm:$0xff]  ;;  %v60_v39 = vld [vmem:[%s620_s1 + $0x138] sm:$0xff] }
   0xe   :  { %127 = vmatpush.msra.mxu0 %v30_v17  ;;  %165 = vmatpush.msra.mxu2 %v64_v23  ;;  %v78_v36 = vld [vmem:[%s620_s1 + $0x1c8] sm:$0xff]  ;;  %v77_v40 = vld [vmem:[%s620_s1 + $0x1c0] sm:$0xff]  ;;  %v24_v41 = vld [vmem:[%s620_s1 + $0x18] sm:$0xff] }
   0xf   :  { %147 = vmatpush.msra.mxu1 %v46_v18  ;;  %185 = vmatpush.msra.mxu3 %v80_v28  ;;  %v40_v42 = vld [vmem:[%s620_s1 + $0x98] sm:$0xff]  ;;  %v59_v43 = vld [vmem:[%s620_s1 + $0x130] sm:$0xff]  ;;  %v58_v47 = vld [vmem:[%s620_s1 + $0x128] sm:$0xff] }
  0x10   :  { %128 = vmatpush.msra.mxu0 %v29_v21  ;;  %166 = vmatpush.msra.mxu2 %v63_v27  ;;  %v76_v44 = vld [vmem:[%s620_s1 + $0x1b8] sm:$0xff]  ;;  %v23_v45 = vld [vmem:[%s620_s1 + $0x10] sm:$0xff]  ;;  %v22_v49 = vld [vmem:[%s620_s1 + $0x8] sm:$0xff] }
  0x11   :  { %148 = vmatpush.msra.mxu1 %v45_v22  ;;  %186 = vmatpush.msra.mxu3 %v79_v32  ;;  %v39_v46 = vld [vmem:[%s620_s1 + $0x90] sm:$0xff]  ;;  %v38_v50 = vld [vmem:[%s620_s1 + $0x88] sm:$0xff]  ;;  %v57_v51 = vld [vmem:[%s620_s1 + $0x120] sm:$0xff] }
  0x12   :  { %129 = vmatpush.msra.mxu0 %v28_v25  ;;  %167 = vmatpush.msra.mxu2 %v62_v31  ;;  %v75_v48 = vld [vmem:[%s620_s1 + $0x1b0] sm:$0xff]  ;;  %v74_v52 = vld [vmem:[%s620_s1 + $0x1a8] sm:$0xff]  ;;  %v21_v53 = vld [vmem:[%s620_s1] sm:$0xff] }
  0x13   :  { %149 = vmatpush.msra.mxu1 %v44_v26  ;;  %187 = vmatpush.msra.mxu3 %v78_v36  ;;  %v37_v54 = vld [vmem:[%s620_s1 + $0x80] sm:$0xff]  ;;  %v100_v55 = vld [vmem:[%s620_s1 + $0x278] sm:$0xff]  ;;  %v99_v59 = vld [vmem:[%s620_s1 + $0x270] sm:$0xff] }
  0x14   :  { %130 = vmatpush.msra.mxu0 %v27_v29  ;;  %168 = vmatpush.msra.mxu2 %v61_v35  ;;  %v116_v56 = vld [vmem:[%s620_s1 + $0x2f8] sm:$0xff]  ;;  %v73_v58 = vld [vmem:[%s620_s1 + $0x1a0] sm:$0xff]  ;;  %v115_v60 = vld [vmem:[%s620_s1 + $0x2f0] sm:$0xff] }
  0x15   :  { %150 = vmatpush.msra.mxu1 %v43_v30  ;;  %188 = vmatpush.msra.mxu3 %v77_v40  ;;  %v56_v57 = vld [vmem:[%s620_s1 + $0x118] sm:$0xff]  ;;  %v55_v61 = vld [vmem:[%s620_s1 + $0x110] sm:$0xff]  ;;  %v98_v63 = vld [vmem:[%s620_s1 + $0x268] sm:$0xff] }
  0x16   :  { %131 = vmatpush.msra.mxu0 %v26_v33  ;;  %169 = vmatpush.msra.mxu2 %v60_v39  ;;  %v72_v62 = vld [vmem:[%s620_s1 + $0x198] sm:$0xff]  ;;  %v114_v0 = vld [vmem:[%s620_s1 + $0x2e8] sm:$0xff]  ;;  %v71_v2 = vld [vmem:[%s620_s1 + $0x190] sm:$0xff] }
  0x17   :  { %151 = vmatpush.msra.mxu1 %v42_v34  ;;  %189 = vmatpush.msra.mxu3 %v76_v44  ;;  %v54_v1 = vld [vmem:[%s620_s1 + $0x108] sm:$0xff] }
  0x18   :  { %132 = vmatpush.msra.mxu0 %v25_v37  ;;  %170 = vmatpush.msra.mxu2 %v59_v43 }
  0x19   :  { %152 = vmatpush.msra.mxu1 %v41_v38  ;;  %190 = vmatpush.msra.mxu3 %v75_v48 }
  0x1a   :  { %133 = vmatpush.msra.mxu0 %v24_v41  ;;  %171 = vmatpush.msra.mxu2 %v58_v47 }
  0x1b   :  { %153 = vmatpush.msra.mxu1 %v40_v42  ;;  %191 = vmatpush.msra.mxu3 %v74_v52 }
  0x1c   :  { %134 = vmatpush.msra.mxu0 %v23_v45  ;;  %172 = vmatpush.msra.mxu2 %v57_v51 }
  0x1d   :  { %154 = vmatpush.msra.mxu1 %v39_v46  ;;  %192 = vmatpush.msra.mxu3 %v73_v58 }
  0x1e   :  { %135 = vmatpush.msra.mxu0 %v22_v49  ;;  %173 = vmatpush.msra.mxu2 %v56_v57 }
  0x1f   :  { %155 = vmatpush.msra.mxu1 %v38_v50 }
  0x20   :  { %136 = vmatpush.msra.mxu0 %v21_v53 }
  0x21   :  { %156 = vmatpush.msra.mxu1 %v37_v54 }
  0x22   :  { %201 = vmatpush.msrb.mxu0 %v100_v55 }
  0x23   :  { %221 = vmatpush.msrb.mxu1 %v116_v56 }
  0x24   :  { %202 = vmatpush.msrb.mxu0 %v99_v59 }
  0x25   :  { %222 = vmatpush.msrb.mxu1 %v115_v60 }
  0x26   :  { %8 = vsyncpa [#allocation3], 0  ;;  %v97_v3 = vld [vmem:[%s620_s1 + $0x260] sm:$0xff]  ;;  %174 = vmatpush.msra.mxu2 %v55_v61  ;;  %193 = vmatpush.msra.mxu3 %v72_v62  ;;  %v70_v6 = vld [vmem:[%s620_s1 + $0x188] sm:$0xff]  ;;  %s249_s4 = sshll.u32 %s622_s3, 4  ;;  %s250_s4 = int_to_ptr.hbm [resolvable:$true] %s249_s4 }
  0x27   :  { %v113_v4 = vld [vmem:[%s620_s1 + $0x2e0] sm:$0xff]  ;;  %203 = vmatpush.msrb.mxu0 %v98_v63  ;;  %223 = vmatpush.msrb.mxu1 %v114_v0  ;;  %v96_v7 = vld [vmem:[%s620_s1 + $0x258] sm:$0xff]  ;;  %v17_v9 = vld [vmem:[%s619_s0 + $0x10] sm:$0xff] }
  0x28   :  { %v53_v5 = vld [vmem:[%s620_s1 + $0x100] sm:$0xff]  ;;  %v112_v8 = vld [vmem:[%s620_s1 + $0x2d8] sm:$0xff]  ;;  %175 = vmatpush.msra.mxu2 %v54_v1  ;;  %194 = vmatpush.msra.mxu3 %v71_v2  ;;  %v95_v11 = vld [vmem:[%s620_s1 + $0x250] sm:$0xff] }
  0x29   :  { %204 = vmatpush.msrb.mxu0 %v97_v3  ;;  %224 = vmatpush.msrb.mxu1 %v113_v4  ;;  %v69_v10 = vld [vmem:[%s620_s1 + $0x180] sm:$0xff]  ;;  %v111_v12 = vld [vmem:[%s620_s1 + $0x2d0] sm:$0xff]  ;;  %v18_v14 = vld [vmem:[%s619_s0 + $0x18] sm:$0xff] }
  0x2a   :  { %176 = vmatpush.msra.mxu2 %v53_v5  ;;  %195 = vmatpush.msra.mxu3 %v70_v6  ;;  %v15_v13 = vld [vmem:[%s619_s0] sm:$0xff]  ;;  %v94_v15 = vld [vmem:[%s620_s1 + $0x248] sm:$0xff]  ;;  %v92_v20 = vld [vmem:[%s620_s1 + $0x238] sm:$0xff] }
  0x2b   :  { %205 = vmatpush.msrb.mxu0 %v96_v7  ;;  %225 = vmatpush.msrb.mxu1 %v112_v8  ;;  %v110_v16 = vld [vmem:[%s620_s1 + $0x2c8] sm:$0xff]  ;;  %v93_v18 = vld [vmem:[%s620_s1 + $0x240] sm:$0xff]  ;;  %v108_v21 = vld [vmem:[%s620_s1 + $0x2b8] sm:$0xff] }
  0x2c   :  { %177 = vmatmul.f32.vlgmr.msra.gmra.mxu2 %v17_v9  ;;  %196 = vmatpush.msra.mxu3 %v69_v10  ;;  %v16_v17 = vld [vmem:[%s619_s0 + $0x8] sm:$0xff]  ;;  %v109_v19 = vld [vmem:[%s620_s1 + $0x2c0] sm:$0xff]  ;;  %v91_v22 = vld [vmem:[%s620_s1 + $0x230] sm:$0xff] }
  0x2d   :  { %206 = vmatpush.msrb.mxu0 %v95_v11  ;;  %226 = vmatpush.msrb.mxu1 %v111_v12  ;;  %v107_v23 = vld [vmem:[%s620_s1 + $0x2b0] sm:$0xff]  ;;  %v90_v24 = vld [vmem:[%s620_s1 + $0x228] sm:$0xff]  ;;  %v89_v26 = vld [vmem:[%s620_s1 + $0x220] sm:$0xff] }
  0x2e   :  { %137 = vmatmul.f32.vlgmr.msra.gmra.mxu0 %v15_v13  ;;  %197 = vmatmul.f32.vlgmr.msra.gmra.mxu3 %v18_v14  ;;  %v106_v25 = vld [vmem:[%s620_s1 + $0x2a8] sm:$0xff]  ;;  %v105_v27 = vld [vmem:[%s620_s1 + $0x2a0] sm:$0xff]  ;;  %v88_v28 = vld [vmem:[%s620_s1 + $0x218] sm:$0xff] }
  0x2f   :  { %207 = vmatpush.msrb.mxu0 %v94_v15  ;;  %227 = vmatpush.msrb.mxu1 %v110_v16  ;;  %v104_v29 = vld [vmem:[%s620_s1 + $0x298] sm:$0xff]  ;;  %v87_v30 = vld [vmem:[%s620_s1 + $0x210] sm:$0xff]  ;;  %v86_v32 = vld [vmem:[%s620_s1 + $0x208] sm:$0xff] }
  0x30   :  { %157 = vmatmul.f32.vlgmr.msra.gmra.mxu1 %v16_v17  ;;  %v103_v31 = vld [vmem:[%s620_s1 + $0x290] sm:$0xff]  ;;  %v102_v33 = vld [vmem:[%s620_s1 + $0x288] sm:$0xff]  ;;  %v85_v34 = vld [vmem:[%s620_s1 + $0x200] sm:$0xff] }
  0x31   :  { %208 = vmatpush.msrb.mxu0 %v93_v18  ;;  %228 = vmatpush.msrb.mxu1 %v109_v19  ;;  %v101_v35 = vld [vmem:[%s620_s1 + $0x280] sm:$0xff]  ;;  %v20_v37 = vld [vmem:[%s619_s0 + $0x28] sm:$0xff]  ;;  %s286_s1 = smov [#allocation2]  }
  0x32   :  { %v19_v36 = vld [vmem:[%s619_s0 + $0x20] sm:$0xff]  ;;  %s247_s0 = sshll.u32 %s286_s1, 4  ;;  %s248_s0 = int_to_ptr.vmem [resolvable:$true] %s247_s0 }
  0x33   :  { %209 = vmatpush.msrb.mxu0 %v92_v20  ;;  %229 = vmatpush.msrb.mxu1 %v108_v21  ;;  %v259_v38 = vld [vmem:[%s621_s2] ss:$0 sm:$0xff] }
  0x35   :  { %210 = vmatpush.msrb.mxu0 %v91_v22  ;;  %230 = vmatpush.msrb.mxu1 %v107_v23 }
  0x37   :  { %211 = vmatpush.msrb.mxu0 %v90_v24  ;;  %231 = vmatpush.msrb.mxu1 %v106_v25 }
  0x39   :  { %212 = vmatpush.msrb.mxu0 %v89_v26  ;;  %232 = vmatpush.msrb.mxu1 %v105_v27 }
  0x3b   :  { %213 = vmatpush.msrb.mxu0 %v88_v28  ;;  %233 = vmatpush.msrb.mxu1 %v104_v29 }
  0x3d   :  { %214 = vmatpush.msrb.mxu0 %v87_v30  ;;  %234 = vmatpush.msrb.mxu1 %v103_v31 }
  0x3f   :  { %215 = vmatpush.msrb.mxu0 %v86_v32  ;;  %235 = vmatpush.msrb.mxu1 %v102_v33 }
  0x41   :  { %216 = vmatpush.msrb.mxu0 %v85_v34  ;;  %236 = vmatpush.msrb.mxu1 %v101_v35 }
  0x42   :  { %217 = vmatmul.f32.vlgmr.msrb.gmra.mxu0 %v19_v36  ;;  %237 = vmatmul.f32.vlgmr.msrb.gmra.mxu1 %v20_v37 }
  0xab   :  { %v138_v39 = vpop.f32.mrf.mxu0 }
  0xac   :  { %v139_v40 = vadd.f32 %v259_v38, %v138_v39 }
  0xad   :  { %v158_v41 = vpop.f32.mrf.mxu1 }
  0xae   :  { %v159_v42 = vadd.f32 %v158_v41, %v139_v40 }
  0xaf   :  { %v178_v43 = vpop.f32.mrf.mxu2 }
  0xb0   :  { %v179_v44 = vadd.f32 %v178_v43, %v159_v42 }
  0xb1   :  { %v198_v45 = vpop.f32.mrf.mxu3 }
  0xb2   :  { %v199_v46 = vadd.f32 %v198_v45, %v179_v44 }
  0xbf   :  { %v218_v47 = vpop.f32.mrf.mxu0  ;;  %v238_v48 = vpop.f32.mrf.mxu1 }
  0xc0   :  { %v219_v49 = vadd.f32 %v218_v47, %v199_v46 }
  0xc2   :  { %v239_v50 = vadd.f32 %v238_v48, %v219_v49 }
  0xc4   :  { %241 = vst [vmem:[#allocation2] sm:$0xff] %v239_v50 }
  0xc5   :  { %252 = dma.vmem_to_hbm [thread:$0]  %s248_s0, 128, %s250_s4, [#allocation3]  }
  0xc6   :  { %284 = dma.done.wait [#allocation3], 128  }
  0xc7   :  { %285 = vsyncadd [#allocation3], 4294967168 }
  0xc8   :  { %257 = vsyncpa [#allocation3], 1 }

</bundles_post_ra>
